<compile_context>
chip_gen: v5e
topology: v5e:2x2
jax: 0.10.0
libtpu: 0.0.40
codegen_flags: <defaults>
</compile_context>

<pallas_src>
import jax
import jax.numpy as jnp
from jax.experimental import pallas as pl
from jax.experimental.pallas import tpu as pltpu


def _apply_attention_kernel(x_ref, a_ref, wm_ref, att_ref):
    # x_ref  : (BN, c, s)   input features (native dtype)
    # a_ref  : (BN, g, s)   attention logits
    # wm_ref : (BN, g, c)   output weighted means
    # att_ref: (BN, g, s)   output softmaxed attention
    bn, g, s = a_ref.shape
    c = x_ref.shape[1]

    # Fold (BN, g, s) -> (BN*g, s) so the VPU/EUP/XLU softmax work runs on
    # sublane-dense tiles (g is tiny, ~2).
    a = a_ref[...].astype(jnp.float32).reshape(bn * g, s)

    # Numerically-stable softmax pieces (normalization deferred).
    m = jnp.max(a, axis=-1, keepdims=True)            # (BN*g, 1)
    e = jnp.exp(a - m)                                # (BN*g, s)
    denom = jnp.sum(e, axis=-1, keepdims=True)        # (BN*g, 1)
    inv = pl.reciprocal(denom, approx=True)           # EUP vrcp, ~free slot

    # Softmaxed attention output.
    p = e * inv                                       # (BN*g, s)
    att_ref[...] = p.reshape(bn, g, s).astype(att_ref.dtype)

    # weighted_mean[b, g, c] = sum_s softmax(a)[b, g, s] * x[b, c, s]
    # Contract with the un-normalized e (MXU can start as soon as e is ready),
    # scale the small (BN, g, c) result afterwards.
    x = x_ref[...]                                    # (BN, c, s), native dtype
    e_b = e.reshape(bn, g, s).astype(x.dtype)         # values in [0, 1]
    wm_un = jnp.einsum(
        "bgs,bcs->bgc", e_b, x, preferred_element_type=jnp.float32
    )                                                 # (BN, g, c)
    wm = wm_un * inv.reshape(bn, g, 1)
    wm_ref[...] = wm.astype(wm_ref.dtype)


def apply_attention(input_nchw, attention_nghw, *, block_n=None):
    """Pallas implementation of ApplyAttention.forward.

    input_nchw:     (n, c, *spatial)
    attention_nghw: (n, g, *spatial)
    returns (weighted_mean (n, g, c), attention_softmax (n, g, prod(spatial)))
    """
    n, c = input_nchw.shape[:2]
    g = attention_nghw.shape[1]
    s = 1
    for d in input_nchw.shape[2:]:
        s *= d

    x = input_nchw.reshape(n, c, s)
    a = attention_nghw.reshape(n, g, s)

    itemsize = jnp.dtype(input_nchw.dtype).itemsize

    if block_n is None:
        # Amortize per-step overhead but keep >=2 grid steps (v7x megacore)
        # and stay well inside VMEM (budget against v7x's 64 MiB physical:
        # ~12 MiB per input block x 2 pipeline buffers).
        bn = max(1, min(8, n // 2)) if n >= 2 else 1
        per_elem_bytes = (c * s + 2 * g * s + g * c) * 4  # f32 worst case
        bn = max(1, min(bn, (12 * 1024 * 1024) // max(per_elem_bytes, 1)))
    else:
        bn = max(1, min(block_n, n))

    # Pad batch to a multiple of bn (padded rows are sliced off afterwards;
    # softmax of zero logits is uniform, no NaNs).
    n_blocks = pl.cdiv(n, bn)
    n_pad = n_blocks * bn
    if n_pad != n:
        x = jnp.pad(x, ((0, n_pad - n), (0, 0), (0, 0)))
        a = jnp.pad(a, ((0, n_pad - n), (0, 0), (0, 0)))

    out_shapes = (
        jax.ShapeDtypeStruct((n_pad, g, c), input_nchw.dtype),
        jax.ShapeDtypeStruct((n_pad, g, s), attention_nghw.dtype),
    )

    cost = pl.CostEstimate(
        flops=2 * n_pad * g * c * s,
        transcendentals=n_pad * g * s,
        bytes_accessed=n_pad * (c * s + 2 * g * s + g * c) * itemsize,
    )

    # TODO(synk): for very large c*s, add an inner "arbitrary" grid axis over s
    # with an online-softmax + f32 accumulator scratch instead of shrinking bn.
    wm, att = pl.pallas_call(
        _apply_attention_kernel,
        out_shape=out_shapes,
        grid_spec=pltpu.PrefetchScalarGridSpec(
            num_scalar_prefetch=0,
            grid=(n_blocks,),
            in_specs=[
                pl.BlockSpec((bn, c, s), lambda i: (i, 0, 0)),
                pl.BlockSpec((bn, g, s), lambda i: (i, 0, 0)),
            ],
            out_specs=[
                pl.BlockSpec((bn, g, c), lambda i: (i, 0, 0)),
                pl.BlockSpec((bn, g, s), lambda i: (i, 0, 0)),
            ],
        ),
        compiler_params=pltpu.CompilerParams(
            dimension_semantics=("parallel",),
            vmem_limit_bytes=64 * 1024 * 1024,
        ),
        cost_estimate=cost,
    )(x, a)

    if n_pad != n:
        wm = wm[:n]
        att = att[:n]
    return wm, att


def _reference(input_nchw, attention_nghw):
    n, c = input_nchw.shape[:2]
    g = attention_nghw.shape[1]
    x = input_nchw.reshape(n, 1, c, -1)
    a = attention_nghw.reshape(n, g, -1)
    a = jax.nn.softmax(a, axis=-1)[:, :, None, :]
    weighted = a * x
    return weighted.sum(axis=-1), a.squeeze(2)


if __name__ == "__main__":
    key = jax.random.PRNGKey(0)
    k1, k2 = jax.random.split(key)
    n, c, h, w, glimpses = 2, 4, 16, 16, 2

    x = jax.random.normal(k1, (n, c, h, w), dtype=jnp.float32)
    att = jax.random.normal(k2, (n, glimpses, h, w), dtype=jnp.float32)

    wm, att_soft = apply_attention(x, att)
    jax.block_until_ready((wm, att_soft))

    wm_ref, att_ref = _reference(x, att)
    # Tolerances account for the EUP approximate reciprocal in the softmax
    # normalization (pl.reciprocal(approx=True)).
    assert jnp.allclose(wm, wm_ref, atol=2e-3, rtol=2e-3)
    assert jnp.allclose(att_soft, att_ref, atol=2e-3, rtol=2e-3)

    print("KERNEL_OK")
</pallas_src>

<mosaic_0001>
module attributes {stable_mosaic.version = 11 : i64} {
  func.func @_apply_attention_kernel(%arg0: i32, %arg1: memref<1x4x256xf32, #tpu.memory_space<vmem>>, %arg2: memref<1x2x256xf32, #tpu.memory_space<vmem>>, %arg3: memref<1x2x4xf32, #tpu.memory_space<vmem>>, %arg4: memref<1x2x256xf32, #tpu.memory_space<vmem>>) attributes {dimension_semantics = [#tpu.dimension_semantics<parallel>], iteration_bounds = array<i64: 2>, scalar_prefetch = 0 : i64, scratch_operands = 0 : i64, tpu.core_type = #tpu.core_type<tc>, window_params = [{transform_indices = @transform_0, window_bounds = array<i64: 1, 4, 256>}, {transform_indices = @transform_1, window_bounds = array<i64: 1, 2, 256>}, {transform_indices = @transform_2, window_bounds = array<i64: 1, 2, 4>}, {transform_indices = @transform_3, window_bounds = array<i64: 1, 2, 256>}]} {
    %c0 = arith.constant 0 : index
    %c0_0 = arith.constant 0 : index
    %c0_1 = arith.constant 0 : index
    %0 = vector.load %arg2[%c0, %c0_0, %c0_1] : memref<1x2x256xf32, #tpu.memory_space<vmem>>, vector<1x2x256xf32>
    %1 = vector.shape_cast %0 : vector<1x2x256xf32> to vector<2x256xf32>
    %cst = arith.constant dense<0xFF800000> : vector<2xf32>
    %2 = vector.multi_reduction <maximumf>, %1, %cst [1] : vector<2x256xf32> to vector<2xf32>
    %3 = vector.shape_cast %2 : vector<2xf32> to vector<2x1xf32>
    %4 = vector.broadcast %3 : vector<2x1xf32> to vector<2x256xf32>
    %5 = arith.subf %1, %4 : vector<2x256xf32>
    %6 = math.exp %5 : vector<2x256xf32>
    %cst_2 = arith.constant dense<0.000000e+00> : vector<2xf32>
    %7 = vector.multi_reduction <add>, %6, %cst_2 [1] : vector<2x256xf32> to vector<2xf32>
    %8 = vector.shape_cast %7 : vector<2xf32> to vector<2x1xf32>
    %9 = tpu.reciprocal %8 {approx = true} : vector<2x1xf32> -> vector<2x1xf32>
    %10 = vector.broadcast %9 : vector<2x1xf32> to vector<2x256xf32>
    %11 = arith.mulf %6, %10 : vector<2x256xf32>
    %12 = vector.shape_cast %11 : vector<2x256xf32> to vector<1x2x256xf32>
    %c0_3 = arith.constant 0 : index
    %c0_4 = arith.constant 0 : index
    %c0_5 = arith.constant 0 : index
    %13 = vector.load %arg4[%c0_3, %c0_4, %c0_5] : memref<1x2x256xf32, #tpu.memory_space<vmem>>, vector<1x2x256xf32>
    tpu.vector_store %arg4[%c0_3, %c0_4, %c0_5], %12 {strides = array<i32>} : memref<1x2x256xf32, #tpu.memory_space<vmem>>, vector<1x2x256xf32>,
    %c0_6 = arith.constant 0 : index
    %c0_7 = arith.constant 0 : index
    %c0_8 = arith.constant 0 : index
    %14 = vector.load %arg1[%c0_6, %c0_7, %c0_8] : memref<1x4x256xf32, #tpu.memory_space<vmem>>, vector<1x4x256xf32>
    %15 = vector.shape_cast %6 : vector<2x256xf32> to vector<1x2x256xf32>
    "tpu.trace_start"() <{level = 10 : i32, message = "bgs,bcs->bgc"}> : () -> ()
    %cst_9 = arith.constant dense<0.000000e+00> : vector<1x2x4xf32>
    %16 = tpu.matmul %15, %14, %cst_9 {dimension_numbers = #tpu.dot_dimension_numbers<[2], [2], [1], [1], [0, 0, 0, 1, 1, 1], [0], [0]>} : vector<1x2x256xf32>, vector<1x4x256xf32>, vector<1x2x4xf32> -> vector<1x2x4xf32>
    "tpu.trace_stop"() : () -> ()
    %17 = vector.shape_cast %9 : vector<2x1xf32> to vector<1x2x1xf32>
    %18 = vector.broadcast %17 : vector<1x2x1xf32> to vector<1x2x4xf32>
    %19 = arith.mulf %16, %18 : vector<1x2x4xf32>
    %c0_10 = arith.constant 0 : index
    %c0_11 = arith.constant 0 : index
    %c0_12 = arith.constant 0 : index
    %20 = vector.load %arg3[%c0_10, %c0_11, %c0_12] : memref<1x2x4xf32, #tpu.memory_space<vmem>>, vector<1x2x4xf32>
    tpu.vector_store %arg3[%c0_10, %c0_11, %c0_12], %19 {strides = array<i32>} : memref<1x2x4xf32, #tpu.memory_space<vmem>>, vector<1x2x4xf32>,
    return
  }
  func.func @transform_0(%arg0: i32) -> (i32, i32, i32) {
    %c0_i32 = arith.constant 0 : i32
    %c0_i32_0 = arith.constant 0 : i32
    %c0_i32_1 = arith.constant 0 : i32
    return %arg0, %c0_i32, %c0_i32_0 : i32, i32, i32
  }
  func.func @transform_1(%arg0: i32) -> (i32, i32, i32) {
    %c0_i32 = arith.constant 0 : i32
    %c0_i32_0 = arith.constant 0 : i32
    %c0_i32_1 = arith.constant 0 : i32
    return %arg0, %c0_i32, %c0_i32_0 : i32, i32, i32
  }
  func.func @transform_2(%arg0: i32) -> (i32, i32, i32) {
    %c0_i32 = arith.constant 0 : i32
    %c0_i32_0 = arith.constant 0 : i32
    %c0_i32_1 = arith.constant 0 : i32
    return %arg0, %c0_i32, %c0_i32_0 : i32, i32, i32
  }
  func.func @transform_3(%arg0: i32) -> (i32, i32, i32) {
    %c0_i32 = arith.constant 0 : i32
    %c0_i32_0 = arith.constant 0 : i32
    %c0_i32_1 = arith.constant 0 : i32
    return %arg0, %c0_i32, %c0_i32_0 : i32, i32, i32
  }
}

</mosaic_0001>

<bundles_post_ra>
// kernel: tpu_custom_call.1
= control target key start
LH: loop header
LB: loop body
LE: loop exit
PB: predicated region body
PF: predicated region fallthrough
CT: control target
= control target key end

     0   :  { %9 = vsyncpa [#allocation3], 0  ;;  %s959_s0 = inlined_call_operand.hbm [shape: f32[2,4,256], index: 0, kind: input, shape index: {}]   ;;  %s960_s1 = inlined_call_operand.hbm [shape: f32[2,2,256], index: 1, kind: input, shape index: {}]   ;;  %s961_s2 = inlined_call_operand.hbm [shape: f32[2,2,4], index: 2, kind: output, shape index: {0}]   ;;  %s962_s3 = inlined_call_operand.hbm [shape: f32[2,2,256], index: 3, kind: output, shape index: {1}]  }
   0x1   :  { %11 = vsyncpa [#allocation3 + $0x1], 0 }
   0x2   :  { %12 = vsyncpa [#allocation6], 0 }
   0x3   :  { %14 = vsyncpa [#allocation6 + $0x1], 0 }
   0x4   :  { %15 = vsyncpa [#allocation4], 0 }
   0x5   :  { %17 = vsyncpa [#allocation4 + $0x1], 0 }
   0x6   :  { %18 = vsyncpa [#allocation9], 0 }
   0x7   :  { %20 = vsyncpa [#allocation9 + $0x1], 0  ;;  %s769_s12 = smov 0   ;;  %s771_s13 = smov 0  }
   0x8   :  { %s773_s14 = smov 0   ;;  %s775_s15 = smov 0  }
   0x9 LB: > { %s790_s16 = sadd.s32 4294967295, %s746_s15   ;;  %s499_s17 = sadd.s32 4294967294, %s746_s15   ;;  %s746_s15 = sphi %s775_s15, %s973_s15   ;;  %s742_s14 = sphi %s773_s14, %s972_s14   ;;  %s738_s13 = sphi %s771_s13, %s971_s13   ;;  %s734_s12 = sphi %s769_s12, %s970_s12  }
   0xa   : > { %s794_s18 = sadd.s32 1, %s746_s15   ;;  %s33_s19 = sadd.s32 1, %s742_s14 }
   0xb   : > { %s30_s20 = ssub.s32 %s746_s15, %s794_s18  ;;  %p40_p0 = scmp.ne.s32.totalorder %s742_s14, %s738_s13 }
   0xc   : > { %p31_p1 = scmp.eq.s32.totalorder %s30_s20, 0  ;;  %p41_p2 = scmp.eq.s32.totalorder %s746_s15, 0 }
   0xd   : > { %p46_p3 = scmp.ne.s32.totalorder %s738_s13, %s734_s12  ;;  %p47_p4 = scmp.eq.s32.totalorder %s790_s16, 0 }
   0xe   : > { %s806_s21 = scalar_select %p31_p1, %s742_s14, %s33_s19  }
   0xf   : > { %p808_p5 = por %p41_p2, %p40_p0  ;;  %p812_p6 = por %p47_p4, %p46_p3 }
  0x10   : > { %p96_p7 = scmp.eq.s32.totalorder %s790_s16, 1  ;;  %p102_p8 = scmp.eq.s32.totalorder %s499_s17, 1 }
  0x11   : > { %p545_p10 = scmp.lt.s32.totalorder %s746_s15, 2  ;;  %s828_s26 = sand.u32 1, %s742_s14  }
  0x12   : > { %p819_p11 = por %p96_p7, %p40_p0  ;;  %p823_p12 = por %p102_p8, %p46_p3 }
  0x13   : > { %s520_s27 = sshll.u32 %s746_s15, 3  ;;  %s502_s28 = sshll.u32 %s828_s26, 3 }
  0x14   : > { %s157_s4 = scalar_lea.hbm %s959_s0, %s520_s27  ;;  %s152_s6 = scalar_lea.vmem [#allocation2], %s502_s28 }
  0x15   : > { %s159_s5 = sshll.u32 %s157_s4, 4  ;;  %s161_s7 = sshll.u32 %s152_s6, 4  ;;  %s160_s5 = int_to_ptr.hbm [resolvable:$true] %s159_s5  ;;  %s162_s7 = int_to_ptr.vmem [resolvable:$true] %s161_s7 }
  0x16   : > { %p837_p13 = pnand %p545_p10, %p808_p5  ;;  %p508_p0 = scmp.ge.s32.totalorder %s746_s15, 1 }
  0x17   : > { %p186_p1 = scmp.lt.s32.totalorder %s746_s15, 3  ;;  %s505_s9 = sshll.u32 %s828_s26, 2 }
  0x18   : > { %s149_s10 = scalar_lea.sflag [#allocation3], %s828_s26  ;;  %s584_s11 = sshra.s32 %s160_s5, 4  ;;  %s585_s11 = int_to_ptr.hbm [resolvable:$true] %s584_s11 }
  0x19   : > { %s586_s17 = scalar_lea.hbm %s585_s11, 8  ;;  %p588_p3 = pneg %p837_p13 }
  0x1a   : > { %p587_p2 = scmp.ne.s32.totalorder %s585_s11, %s586_s17  ;;  %s591_s22 = scalar_lea.hbm %s959_s0, 16 }
  0x1b   : > { %p592_p5 = scmp.lt.s32.totalorder %s585_s11, %s959_s0  ;;  %p593_p8 = scmp.lt.s32.totalorder %s591_s22, %s586_s17 }
  0x1c   : > { %p589_p4 = pnand %p588_p3, %p587_p2 }
  0x1d   : > { %p594_p10 = por %p593_p8, %p592_p5 }
  0x1e   : > { %p590_p7 = pneg %p589_p4 }
  0x20   : > { %p595_p9 = pnand %p594_p10, %p590_p7 }
  0x22   : > { %598 = shalt.err (!%p595_p9)
}
  0x23   : > { %534 = dma.hbm_to_vmem [thread:$0]  (!%p837_p13), %s160_s5, 128, %s162_s7, %s149_s10  }
  0x24   : > { %p862_p2 = pnand %p508_p0, %p186_p1  ;;  %s521_s30 = sshll.u32 %s746_s15, 2 }
  0x25   : > { %s172_s4 = scalar_lea.vmem [#allocation5], %s505_s9  ;;  %s177_s19 = scalar_lea.hbm %s960_s1, %s521_s30 }
  0x26   : > { %s181_s6 = sshll.u32 %s172_s4, 4  ;;  %s179_s20 = sshll.u32 %s177_s19, 4  ;;  %s182_s6 = int_to_ptr.vmem [resolvable:$true] %s181_s6  ;;  %s180_s20 = int_to_ptr.hbm [resolvable:$true] %s179_s20 }
  0x27   : > { %s169_s22 = scalar_lea.sflag [#allocation6], %s828_s26  ;;  %s614_s27 = sshra.s32 %s180_s20, 4  ;;  %s615_s27 = int_to_ptr.hbm [resolvable:$true] %s614_s27 }
  0x28   : > { %s616_s5 = scalar_lea.hbm %s615_s27, 4  ;;  %s621_s9 = scalar_lea.hbm %s960_s1, 8 }
  0x29   : > { %p617_p9 = scmp.ne.s32.totalorder %s615_s27, %s616_s5  ;;  %p622_p4 = scmp.lt.s32.totalorder %s615_s27, %s960_s1 }
  0x2a   : > { %p623_p7 = scmp.lt.s32.totalorder %s621_s9, %s616_s5 }
  0x2b   : > { %p619_p0 = pnand %p617_p9, %p588_p3 }
  0x2c   : > { %p624_p5 = por %p623_p7, %p622_p4 }
  0x2d   : > { %p620_p1 = pneg %p619_p0 }
  0x2f   : > { %p625_p8 = pnand %p624_p5, %p620_p1 }
  0x31   : > { %628 = shalt.err (!%p625_p8)
}
  0x32   : > { %537 = dma.hbm_to_vmem [thread:$0]  (!%p837_p13), %s180_s20, 64, %s182_s6, %s169_s22  }
  0x33   : > { %190 = sbr.rel (%p862_p2) target bundleno = 361 (0x169), region = 28  ;;  %s885_s26 = sand.u32 (!%p862_p2), 1, %s738_s13  }
  0x34   : > { %s509_s30 = sshll.u32 (!%p862_p2), %s885_s26, 3  ;;  %s193_s11 = scalar_lea.sflag (!%p862_p2), [#allocation3], %s885_s26 }
  0x35   : > { %s889_s17 = scalar_lea.vmem (!%p862_p2), [#allocation2], %s509_s30 }
  0x38   : > { %717 = dma.done.wait (%p812_p6), %s193_s11, 128  }
  0x39   : > { %719 = vsyncadd (%p812_p6), %s193_s11, 4294967168  ;;  %s510_s8 = sshll.u32 %s885_s26, 2  ;;  %s203_s29 = scalar_lea.sflag [#allocation6], %s885_s26 }
  0x3a   : > { %s206_s6 = scalar_lea.vmem [#allocation5], %s510_s8 }
  0x3b   : > { %721 = dma.done.wait (%p812_p6), %s203_s29, 64  }
  0x3c   : > { %723 = vsyncadd (%p812_p6), %s203_s29, 4294967232  ;;  %v240_v0 = vld [vmem:[%s206_s6] sm:$0xf]  ;;  %vm247_vm0 = vcmask 1041408   ;;  %v748_v6 = vmov 269488144  }
  0x3d   : > { %242 = vst [vmem:[#allocation1] ss:$4 sm:$0xff] %v240_v0  ;;  %v255_v7 = vunpack.c.l.s4 %v748_v6  ;;  %v282_v19 = vld [vmem:[%s889_s17] sm:$0xff]  ;;  %s522_s23 = sshll.u32 %s790_s16, 2  ;;  %s239_s27 = scalar_lea.vmem [#allocation8], %s510_s8 }
  0x3e   : > { %s368_s22 = scalar_lea.hbm %s962_s3, %s522_s23  ;;  %s370_s5 = sshll.u32 %s239_s27, 4  ;;  %s371_s5 = int_to_ptr.vmem [resolvable:$true] %s370_s5 }
  0x3f   : > { %v256_v8 = vunpack.c.0.s8 %v255_v7  ;;  %s372_s7 = sshll.u32 %s368_s22, 4  ;;  %s343_s10 = scalar_lea.sflag [#allocation9], %s885_s26  ;;  %s373_s7 = int_to_ptr.hbm [resolvable:$true] %s372_s7 }
  0x40   : > { %s658_s9 = sshra.s32 %s373_s7, 4  ;;  %s664_s11 = scalar_lea.hbm %s962_s3, 8  ;;  %s659_s9 = int_to_ptr.hbm [resolvable:$true] %s658_s9 }
  0x41   : > { %s660_s28 = scalar_lea.hbm %s659_s9, 4  ;;  %p665_p10 = scmp.lt.s32.totalorder %s659_s9, %s962_s3 }
  0x42   : > { %p661_p6 = scmp.ne.s32.totalorder %s659_s9, %s660_s28  ;;  %p666_p2 = scmp.lt.s32.totalorder %s664_s11, %s660_s28 }
  0x44   : > { %v243_v1 = vld.sshfl [vmem:[#allocation1] sm:$0xff pattern:$0x73625140]  ;;  %v244_v2 = vld.sshfl [vmem:[#allocation1 + $0x8] sm:$0xff pattern:$0x73625140]  ;;  %p662_p13 = pnand %p661_p6, %p819_p11  ;;  %p667_p9 = por %p666_p2, %p665_p10 }
  0x45   : > { %v248_v3 = vsel %vm247_vm0, %v243_v1, -inf  ;;  %v249_v4 = vsel %vm247_vm0, %v244_v2, -inf }
  0x46   : > { %v250_v5 = vmax.f32 %v248_v3, %v249_v4  ;;  %p663_p3 = pneg %p662_p13 }
  0x48   : > { %251 = vmax.xlane.f32.xlu0 %v250_v5  ;;  %p668_p0 = pnand %p667_p9, %p663_p3 }
  0xbb   : > { %v252_v9 = vpop.xlane.xlu0 %251 }
  0xbc   : > { %v257_v10 = vperm.slane %v252_v9, %v256_v8 }
  0xbe   : > { %v259_v11 = vsub.f32 %v240_v0, %v257_v10 }
  0xc0   : > { %v260_v12 = vmul.f32 1.442695, %v259_v11 }
  0xc2   : > { %580 = vpow2.f32 %v260_v12 }
  0xc8   : > { %v581_v13 = vpop.eup %580 }
  0xc9   : > { %263 = vst [vmem:[#allocation1] ss:$4 sm:$0xff] %v581_v13 }
  0xd0   : > { %v264_v14 = vld.sshfl [vmem:[#allocation1] sm:$0xff pattern:$0x73625140]  ;;  %v265_v15 = vld.sshfl [vmem:[#allocation1 + $0x8] sm:$0xff pattern:$0x73625140] }
  0xd1   : > { %v268_v16 = vsel %vm247_vm0, %v264_v14, 0.0  ;;  %v269_v17 = vsel %vm247_vm0, %v265_v15, 0.0  ;;  %283 = vst [vmem:[#allocation1] ss:$4 sm:$0xff] %v581_v13 }
  0xd2   : > { %v270_v18 = vadd.f32 %v269_v17, %v268_v16 }
  0xd4   : > { %271 = vadd.xlane.f32.xlu0 %v270_v18 }
  0xd8   : > { %v284_v20 = vld.sshfl [vmem:[#allocation1] sm:$0xff pattern:$0x73625140]  ;;  %v285_v21 = vld.sshfl [vmem:[#allocation1 + $0x8] sm:$0xff pattern:$0x73625140] }
  0xd9   : > { %289 = vst [vmem:[#allocation1] ss:$2 sm:$0xff] %v282_v19 }
  0xe0   : > { %v290_v22 = vld.sshfl [vmem:[#allocation1] sm:$0xff pattern:$0x75316420]  ;;  %v291_v23 = vld.sshfl [vmem:[#allocation1 + $0x8] sm:$0xff pattern:$0x75316420] }
  0xe1   : > { %309 = vmatpush.xpose.msra.mxu0 %v290_v22  ;;  %329 = vmatpush.xpose.msra.mxu1 %v291_v23 }
  0xe4   : > { %310 = vmatmul.f32.vlgmr.msra.gmra.mxu0 %v284_v20  ;;  %330 = vmatmul.f32.vlgmr.msra.gmra.mxu1 %v285_v21 }
 0x147   : > { %v272_v24 = vpop.xlane.xlu0 %271 }
 0x148   : > { %582 = vrcp.f32 %v272_v24 }
 0x14e   : > { %v583_v25 = vpop.eup %582 }
 0x14f   : > { %v278_v26 = vperm.slane %v583_v25, %v256_v8 }
 0x151   : > { %v280_v27 = vmul.f32 %v581_v13, %v278_v26 }
 0x153   : > { %281 = vst [vmem:[%s239_s27] sm:$0xf] %v280_v27 }
 0x154   : > { %671 = shalt.err (!%p668_p0)
}
 0x155   : > { %528 = dma.vmem_to_hbm [thread:$0]  (%p819_p11), %s371_s5, 64, %s373_s7, %s343_s10   ;;  %vm335_vm1 = vcmask 25600  }
 0x156   : > { %s511_s29 = sshll.u32 %s885_s26, 1  ;;  %s515_s6 = sshll.u32 %s790_s16, 1 }
 0x157   : > { %s353_s20 = scalar_lea.hbm %s961_s2, %s515_s6  ;;  %s232_s22 = scalar_lea.vmem [#allocation7], %s511_s29 }
 0x158   : > { %s355_s27 = sshll.u32 %s232_s22, 4  ;;  %s357_s9 = sshll.u32 %s353_s20, 4  ;;  %s356_s27 = int_to_ptr.vmem [resolvable:$true] %s355_s27  ;;  %s358_s9 = int_to_ptr.hbm [resolvable:$true] %s357_s9 }
 0x159   : > { %s338_s28 = scalar_lea.sflag [#allocation4], %s885_s26  ;;  %s686_s5 = sshra.s32 %s358_s9, 4  ;;  %s687_s5 = int_to_ptr.hbm [resolvable:$true] %s686_s5 }
 0x15a   : > { %s688_s16 = scalar_lea.hbm %s687_s5, 2  ;;  %s692_s4 = scalar_lea.hbm %s961_s2, 4 }
 0x15b   : > { %p689_p1 = scmp.ne.s32.totalorder %s687_s5, %s688_s16  ;;  %p693_p5 = scmp.lt.s32.totalorder %s687_s5, %s961_s2 }
 0x15c   : > { %p694_p8 = scmp.lt.s32.totalorder %s692_s4, %s688_s16 }
 0x15d   : > { %p690_p4 = pnand %p689_p1, %p819_p11 }
 0x15e   : > { %p695_p6 = por %p694_p8, %p693_p5 }
 0x15f   : > { %p691_p7 = pneg %p690_p4 }
 0x161   : > { %v311_v28 = vpop.f32.mrf.mxu0  ;;  %v331_v29 = vpop.f32.mrf.mxu1  ;;  %p696_p13 = pnand %p695_p6, %p691_p7 }
 0x162   : > { %v332_v30 = vadd.f32 %v331_v29, %v311_v28 }
 0x164   : > { %v334_v31 = vmul.f32 %v583_v25, %v332_v30 }
 0x166   : > { %336 = vst.msk [vmem:[%s232_s22] sm:$0x3] %vm335_vm1, %v334_v31 }
 0x167   : > { %699 = shalt.err (!%p696_p13)
}
 0x168   : > { %527 = dma.vmem_to_hbm [thread:$0]  (%p819_p11), %s356_s27, 32, %s358_s9, %s338_s28  }
 0x169 PF: > { %s384_s26 = sand.u32 1, %s734_s12   ;;  %p969_p3 = scmp.ge.s32.totalorder %s746_s15, 2 }
 0x16a   : > { %s385_s17 = scalar_lea.sflag [#allocation4], %s384_s26 }
 0x16b   : > { %p539_p10 = pnand %p969_p3, %p823_p12 }
 0x16d   : > { %p540_p2 = pneg %p539_p10 }
 0x16f   : > { %725 = dma.done.wait (%p540_p2), %s385_s17, 32  }
 0x170   : > { %727 = vsyncadd (%p540_p2), %s385_s17, 4294967264  ;;  %s395_s8 = scalar_lea.sflag [#allocation9], %s384_s26 }
 0x171   : > { %729 = dma.done.wait (%p540_p2), %s395_s8, 64  }
 0x172   : > { %731 = vsyncadd (%p540_p2), %s395_s8, 4294967232  ;;  %p23_p11 = scmp.ge.s32.totalorder %s794_s18, 4   ;;  %s970_s12 = smov %s738_s13 }
 0x173   : > { %s971_s13 = smov %s742_s14  ;;  %s972_s14 = smov %s806_s21 }
 0x174   : > { %s973_s15 = smov %s794_s18  ;;  %25 = sbr.rel (!%p23_p11) target bundleno = 9 (0x9), region = 103 }
 0x179   :  { %401 = vsyncpa [#allocation3], 1 }
 0x17a   :  { %403 = vsyncpa [#allocation3 + $0x1], 1 }
 0x17b   :  { %404 = vsyncpa [#allocation6], 1 }
 0x17c   :  { %406 = vsyncpa [#allocation6 + $0x1], 1 }
 0x17d   :  { %407 = vsyncpa [#allocation4], 1 }
 0x17e   :  { %409 = vsyncpa [#allocation4 + $0x1], 1 }
 0x17f   :  { %410 = vsyncpa [#allocation9], 1 }
 0x180   :  { %412 = vsyncpa [#allocation9 + $0x1], 1 }

</bundles_post_ra>
